<compile_context>
chip_gen: v6e
topology: v6e:2x2x1
jax: 0.10.0
libtpu: 0.0.40
codegen_flags: <defaults>
</compile_context>

<pallas_src>
import numpy as np
import jax
import jax.numpy as jnp
from jax.experimental import pallas as pl
from jax.experimental.pallas import tpu as pltpu

NUM_LAYERS = 4


def gin_kernel(xT_ref, adjT_ref, w1_ref, w2_ref, pool_ref, wfcT_ref, bfc_ref,
               logp_ref, xr_ref):
    """One node-block of the GIN forward, transposed [F, NB] activation layout.

    xT_ref   : [F, NB]  bf16   node features (transposed)
    adjT_ref : [NB, NB] bf16   (A + I)^T, i.e. adjT[s, t] = #edges s->t (+ self)
    w1_ref   : [L, F, F] bf16  MLP layer-1 weights (PyTorch [out, in] orientation)
    w2_ref   : [L, F, F] bf16  MLP layer-2 weights
    pool_ref : [G, NB]  bf16   pooling matrix for this block's G graphs
    wfcT_ref : [F, C]   bf16   fc1 weight, pre-transposed
    bfc_ref  : [1, C]   f32    fc1 bias
    logp_ref : [G, C]   f32    log-softmax output
    xr_ref   : [G, F]   f32    pooled features output
    """
    f32 = jnp.float32
    bf16 = jnp.bfloat16

    adjT = adjT_ref[...]                       # bf16, exact for small edge counts
    h = xT_ref[...]                            # bf16 activations, [F, NB]

    for l in range(NUM_LAYERS):                # static unroll (4 layers)
        # GINConv (eps=0) with the self term folded into adjT:
        #   agg[f, t] = sum_s h[f, s] * (A + I)[s -> t]
        agg = jnp.dot(h, adjT, preferred_element_type=f32)          # [F, NB] f32
        # MLP([F, F, F], bias=False, plain_last=False, act=sigmoid), transposed:
        #   out_T = W @ h_T
        h1 = jax.nn.sigmoid(jnp.dot(w1_ref[l], agg.astype(bf16),
                                    preferred_element_type=f32))    # [F, NB] f32
        h = jax.nn.sigmoid(jnp.dot(w2_ref[l], h1.astype(bf16),
                                   preferred_element_type=f32)).astype(bf16)

    # global_add_pool: xr[g, f] = sum_n pool[g, n] * h[f, n]
    xr = jnp.dot(pool_ref[...], h.T, preferred_element_type=f32)    # [G, F] f32
    xr_ref[...] = xr

    # fc1: [G, F] @ [F, C] + [1, C]
    logits = jnp.dot(xr.astype(bf16), wfcT_ref[...],
                     preferred_element_type=f32) + bfc_ref[...]     # [G, C] f32

    # Dropout(p=0.5): eval-mode identity.
    # TODO(synk): training-mode stochastic dropout not implemented (nondeterministic).

    # log_softmax over the (unpadded) class axis.
    m = jnp.max(logits, axis=1, keepdims=True)
    z = logits - m
    lse = jnp.log(jnp.sum(jnp.exp(z), axis=1, keepdims=True))
    logp_ref[...] = z - lse


def gin_forward(x, edge_index, batch, w1, w2, wfc, bfc, *,
                num_graphs, nodes_per_block=128):
    """Build dense per-block operands (JAX glue) and run the fused kernel.

    Assumes graphs are laid out contiguously in `batch` and that no graph's nodes
    cross a `nodes_per_block` boundary (true for the packing used in __main__).
    """
    N, F = x.shape
    C = wfc.shape[0]
    NB = nodes_per_block
    num_blocks = (N + NB - 1) // NB
    Np = num_blocks * NB
    assert num_graphs % num_blocks == 0, "graphs must distribute evenly over node blocks"
    G = num_graphs // num_blocks

    bf16 = jnp.bfloat16
    f32 = jnp.float32

    # ---- JAX glue: dense block operands built once outside the kernel ----------
    # Transposed node features [F, Np] (padded nodes are zero and stay isolated).
    xT = jnp.pad(x, ((0, Np - N), (0, 0))).astype(bf16).T

    # Per-block (A + I)^T: adjT[b, s, t] = #edges s->t within block b, + identity.
    # bf16 is exact while (multiplicity + 1) <= 256.
    src, dst = edge_index[0], edge_index[1]
    adjT = jnp.zeros((num_blocks, NB, NB), f32)
    adjT = adjT.at[src // NB, src % NB, dst % NB].add(1.0)
    adjT = (adjT + jnp.eye(NB, dtype=f32)[None]).astype(bf16)

    # Per-block pooling: pool[b, g, n] = 1 iff node (b*NB + n) belongs to graph (b*G + g).
    batch_p = jnp.pad(batch, (0, Np - N), constant_values=-1)
    batch_blk = batch_p.reshape(num_blocks, NB)
    gids = jnp.arange(num_blocks)[:, None] * G + jnp.arange(G)[None, :]
    pool = (batch_blk[:, None, :] == gids[:, :, None]).astype(bf16)  # [nb, G, NB]

    w1b = w1.astype(bf16)                       # [L, F, F]  (PyTorch [out, in])
    w2b = w2.astype(bf16)
    wfcT = wfc.T.astype(bf16)                   # [F, C]
    bfc2 = bfc.astype(f32).reshape(1, C)

    # Advisory cost estimate (per review): lets XLA schedule the glue around the call.
    flops = num_blocks * (2 * F * NB * NB * NUM_LAYERS      # aggregation matmuls
                          + 2 * 2 * F * F * NB * NUM_LAYERS  # MLP matmuls
                          + 2 * G * NB * F + 2 * G * F * C)  # pooling + fc1
    transcendentals = num_blocks * (2 * NUM_LAYERS * F * NB + G * C + G)
    bytes_accessed = (num_blocks * ((NB * NB + F * NB + G * NB) * 2
                                    + (G * C + G * F) * 4)
                      + (2 * NUM_LAYERS * F * F + F * C) * 2 + C * 4)

    logp, xr = pl.pallas_call(
        gin_kernel,
        grid=(num_blocks,),
        in_specs=[
            pl.BlockSpec((F, NB), lambda i: (0, i)),                  # xT
            pl.BlockSpec((None, NB, NB), lambda i: (i, 0, 0)),        # adjT block
            pl.BlockSpec((NUM_LAYERS, F, F), lambda i: (0, 0, 0)),    # w1 (constant)
            pl.BlockSpec((NUM_LAYERS, F, F), lambda i: (0, 0, 0)),    # w2 (constant)
            pl.BlockSpec((None, G, NB), lambda i: (i, 0, 0)),         # pool block
            pl.BlockSpec((F, C), lambda i: (0, 0)),                   # wfcT (constant)
            pl.BlockSpec((1, C), lambda i: (0, 0)),                   # bfc (constant)
        ],
        out_specs=(
            pl.BlockSpec((G, C), lambda i: (i, 0)),                   # log-probs
            pl.BlockSpec((G, F), lambda i: (i, 0)),                   # pooled features
        ),
        out_shape=(
            jax.ShapeDtypeStruct((num_graphs, C), f32),
            jax.ShapeDtypeStruct((num_graphs, F), f32),
        ),
        compiler_params=pltpu.CompilerParams(
            dimension_semantics=("parallel",)),                       # both v7x TCs
        cost_estimate=pl.CostEstimate(flops=flops,
                                      transcendentals=transcendentals,
                                      bytes_accessed=bytes_accessed),
    )(xT, adjT, w1b, w2b, pool, wfcT, bfc2)
    return logp, xr


def reference_forward(x, edge_index, batch, w1, w2, wfc, bfc, num_graphs):
    """Plain-JAX reference mirroring the kernel numerics (bf16 operands, f32 accum,
    self term folded into the adjacency)."""
    bf16 = jnp.bfloat16
    f32 = jnp.float32
    N = x.shape[0]
    adj = jnp.zeros((N, N), f32).at[edge_index[1], edge_index[0]].add(1.0)
    adj = (adj + jnp.eye(N, dtype=f32)).astype(bf16)                 # A + I
    pool = (batch[None, :] == jnp.arange(num_graphs)[:, None]).astype(bf16)

    h = x.astype(bf16)
    for l in range(NUM_LAYERS):
        agg = jnp.dot(adj, h, preferred_element_type=f32)
        h1 = jax.nn.sigmoid(jnp.dot(agg.astype(bf16), w1[l].astype(bf16).T,
                                    preferred_element_type=f32))
        h = jax.nn.sigmoid(jnp.dot(h1.astype(bf16), w2[l].astype(bf16).T,
                                   preferred_element_type=f32)).astype(bf16)
    xr = jnp.dot(pool, h, preferred_element_type=f32)
    logits = jnp.dot(xr.astype(bf16), wfc.astype(bf16).T,
                     preferred_element_type=f32) + bfc
    return jax.nn.log_softmax(logits, axis=1), xr


if __name__ == "__main__":
    # 64 graphs x 16 nodes = 1024 nodes, grouped into 128- or 256-node grid blocks.
    NUM_GRAPHS = 64
    NODES_PER_GRAPH = 16
    EDGES_PER_GRAPH = 32
    N = NUM_GRAPHS * NODES_PER_GRAPH
    F = 16
    C = 8

    # 256-node blocks fill the 256-wide MXU on v6e/v7x; 128 is native everywhere else.
    kind = jax.devices()[0].device_kind.lower()
    nodes_per_block = 256 if any(s in kind for s in ("v6", "v7", "7x")) else 128

    key = jax.random.PRNGKey(0)
    k_x, k_src, k_dst, k_w1, k_w2, k_fc, k_b = jax.random.split(key, 7)

    # Node features (graph.x)
    x = jax.random.normal(k_x, (N, F), dtype=jnp.float32)

    # edge_index: row 0 = source nodes, row 1 = target nodes (edges stay within graphs,
    # so they never cross node-block boundaries).
    src_local = jax.random.randint(k_src, (NUM_GRAPHS, EDGES_PER_GRAPH), 0, NODES_PER_GRAPH)
    dst_local = jax.random.randint(k_dst, (NUM_GRAPHS, EDGES_PER_GRAPH), 0, NODES_PER_GRAPH)
    offsets = (jnp.arange(NUM_GRAPHS) * NODES_PER_GRAPH)[:, None]
    edge_index = jnp.stack([(src_local + offsets).reshape(-1),
                            (dst_local + offsets).reshape(-1)])      # [2, E]

    # batch assignment: node i belongs to graph i // NODES_PER_GRAPH (contiguous)
    batch = jnp.repeat(jnp.arange(NUM_GRAPHS, dtype=jnp.int32), NODES_PER_GRAPH)

    # Deterministic parameters (shapes match the PyTorch module's __init__):
    #   per layer: two Linear(F, F, bias=False) weights of shape [F_out, F_in]
    #   fc1: Linear(F, C) -> weight [C, F], bias [C]
    scale = 1.0 / np.sqrt(F)
    w1 = jax.random.uniform(k_w1, (NUM_LAYERS, F, F), jnp.float32, -scale, scale)
    w2 = jax.random.uniform(k_w2, (NUM_LAYERS, F, F), jnp.float32, -scale, scale)
    wfc = jax.random.uniform(k_fc, (C, F), jnp.float32, -scale, scale)
    bfc = jax.random.uniform(k_b, (1, C), jnp.float32, -scale, scale)

    logp, xr = gin_forward(x, edge_index, batch, w1, w2, wfc, bfc,
                           num_graphs=NUM_GRAPHS, nodes_per_block=nodes_per_block)
    jax.block_until_ready((logp, xr))

    logp_ref, xr_ref = reference_forward(x, edge_index, batch, w1, w2, wfc, bfc, NUM_GRAPHS)
    np.testing.assert_allclose(np.asarray(logp), np.asarray(logp_ref), rtol=1e-3, atol=2e-3)
    np.testing.assert_allclose(np.asarray(xr), np.asarray(xr_ref), rtol=1e-3, atol=2e-3)

    print("KERNEL_OK")
</pallas_src>

<mosaic_0001>
module attributes {stable_mosaic.version = 11 : i64} {
  func.func @gin_kernel(%arg0: i32, %arg1: memref<16x128xbf16, #tpu.memory_space<vmem>>, %arg2: memref<1x128x128xbf16, #tpu.memory_space<vmem>>, %arg3: memref<4x16x16xbf16, #tpu.memory_space<vmem>>, %arg4: memref<4x16x16xbf16, #tpu.memory_space<vmem>>, %arg5: memref<1x8x128xbf16, #tpu.memory_space<vmem>>, %arg6: memref<16x8xbf16, #tpu.memory_space<vmem>>, %arg7: memref<1x8xf32, #tpu.memory_space<vmem>>, %arg8: memref<8x8xf32, #tpu.memory_space<vmem>>, %arg9: memref<8x16xf32, #tpu.memory_space<vmem>>) attributes {dimension_semantics = [#tpu.dimension_semantics<parallel>], iteration_bounds = array<i64: 8>, scalar_prefetch = 0 : i64, scratch_operands = 0 : i64, tpu.core_type = #tpu.core_type<tc>, window_params = [{transform_indices = @transform_0, window_bounds = array<i64: 16, 128>}, {transform_indices = @transform_1, window_bounds = array<i64: 1, 128, 128>}, {pipeline_mode = #tpu.pipeline_mode<synchronous>, transform_indices = @transform_2, window_bounds = array<i64: 4, 16, 16>}, {pipeline_mode = #tpu.pipeline_mode<synchronous>, transform_indices = @transform_3, window_bounds = array<i64: 4, 16, 16>}, {transform_indices = @transform_4, window_bounds = array<i64: 1, 8, 128>}, {pipeline_mode = #tpu.pipeline_mode<synchronous>, transform_indices = @transform_5, window_bounds = array<i64: 16, 8>}, {pipeline_mode = #tpu.pipeline_mode<synchronous>, transform_indices = @transform_6, window_bounds = array<i64: 1, 8>}, {transform_indices = @transform_7, window_bounds = array<i64: 8, 8>}, {transform_indices = @transform_8, window_bounds = array<i64: 8, 16>}]} {
    %c0 = arith.constant 0 : index
    %c0_0 = arith.constant 0 : index
    %c0_1 = arith.constant 0 : index
    %0 = vector.load %arg2[%c0, %c0_0, %c0_1] : memref<1x128x128xbf16, #tpu.memory_space<vmem>>, vector<1x128x128xbf16>
    %1 = vector.shape_cast %0 : vector<1x128x128xbf16> to vector<128x128xbf16>
    %c0_2 = arith.constant 0 : index
    %c0_3 = arith.constant 0 : index
    %2 = vector.load %arg1[%c0_2, %c0_3] : memref<16x128xbf16, #tpu.memory_space<vmem>>, vector<16x128xbf16>
    %cst = arith.constant dense<0.000000e+00> : vector<16x128xf32>
    %3 = tpu.matmul %2, %1, %cst {dimension_numbers = #tpu.dot_dimension_numbers<[1], [0], [0], [1], [0, 0, 1, 1], [], []>} : vector<16x128xbf16>, vector<128x128xbf16>, vector<16x128xf32> -> vector<16x128xf32>
    %c0_4 = arith.constant 0 : index
    %c0_5 = arith.constant 0 : index
    %c0_6 = arith.constant 0 : index
    %4 = vector.load %arg3[%c0_4, %c0_5, %c0_6] : memref<4x16x16xbf16, #tpu.memory_space<vmem>>, vector<1x16x16xbf16>
    %5 = vector.shape_cast %4 : vector<1x16x16xbf16> to vector<16x16xbf16>
    %6 = arith.truncf %3 : vector<16x128xf32> to vector<16x128xbf16>
    %cst_7 = arith.constant dense<0.000000e+00> : vector<16x128xf32>
    %7 = tpu.matmul %5, %6, %cst_7 {dimension_numbers = #tpu.dot_dimension_numbers<[1], [0], [0], [1], [0, 0, 1, 1], [], []>} : vector<16x16xbf16>, vector<16x128xbf16>, vector<16x128xf32> -> vector<16x128xf32>
    %8 = arith.negf %7 : vector<16x128xf32>
    %9 = math.exp %8 : vector<16x128xf32>
    %cst_8 = arith.constant 1.000000e+00 : f32
    %10 = vector.broadcast %cst_8 : f32 to vector<16x128xf32>
    %11 = arith.addf %10, %9 : vector<16x128xf32>
    %12 = arith.divf %10, %11 : vector<16x128xf32>
    %c0_9 = arith.constant 0 : index
    %c0_10 = arith.constant 0 : index
    %c0_11 = arith.constant 0 : index
    %13 = vector.load %arg4[%c0_9, %c0_10, %c0_11] : memref<4x16x16xbf16, #tpu.memory_space<vmem>>, vector<1x16x16xbf16>
    %14 = vector.shape_cast %13 : vector<1x16x16xbf16> to vector<16x16xbf16>
    %15 = arith.truncf %12 : vector<16x128xf32> to vector<16x128xbf16>
    %cst_12 = arith.constant dense<0.000000e+00> : vector<16x128xf32>
    %16 = tpu.matmul %14, %15, %cst_12 {dimension_numbers = #tpu.dot_dimension_numbers<[1], [0], [0], [1], [0, 0, 1, 1], [], []>} : vector<16x16xbf16>, vector<16x128xbf16>, vector<16x128xf32> -> vector<16x128xf32>
    %17 = arith.negf %16 : vector<16x128xf32>
    %18 = math.exp %17 : vector<16x128xf32>
    %cst_13 = arith.constant 1.000000e+00 : f32
    %19 = vector.broadcast %cst_13 : f32 to vector<16x128xf32>
    %20 = arith.addf %19, %18 : vector<16x128xf32>
    %21 = arith.divf %19, %20 : vector<16x128xf32>
    %22 = arith.truncf %21 : vector<16x128xf32> to vector<16x128xbf16>
    %cst_14 = arith.constant dense<0.000000e+00> : vector<16x128xf32>
    %23 = tpu.matmul %22, %1, %cst_14 {dimension_numbers = #tpu.dot_dimension_numbers<[1], [0], [0], [1], [0, 0, 1, 1], [], []>} : vector<16x128xbf16>, vector<128x128xbf16>, vector<16x128xf32> -> vector<16x128xf32>
    %c1 = arith.constant 1 : index
    %c0_15 = arith.constant 0 : index
    %c0_16 = arith.constant 0 : index
    %24 = vector.load %arg3[%c1, %c0_15, %c0_16] : memref<4x16x16xbf16, #tpu.memory_space<vmem>>, vector<1x16x16xbf16>
    %25 = vector.shape_cast %24 : vector<1x16x16xbf16> to vector<16x16xbf16>
    %26 = arith.truncf %23 : vector<16x128xf32> to vector<16x128xbf16>
    %cst_17 = arith.constant dense<0.000000e+00> : vector<16x128xf32>
    %27 = tpu.matmul %25, %26, %cst_17 {dimension_numbers = #tpu.dot_dimension_numbers<[1], [0], [0], [1], [0, 0, 1, 1], [], []>} : vector<16x16xbf16>, vector<16x128xbf16>, vector<16x128xf32> -> vector<16x128xf32>
    %28 = arith.negf %27 : vector<16x128xf32>
    %29 = math.exp %28 : vector<16x128xf32>
    %cst_18 = arith.constant 1.000000e+00 : f32
    %30 = vector.broadcast %cst_18 : f32 to vector<16x128xf32>
    %31 = arith.addf %30, %29 : vector<16x128xf32>
    %32 = arith.divf %30, %31 : vector<16x128xf32>
    %c1_19 = arith.constant 1 : index
    %c0_20 = arith.constant 0 : index
    %c0_21 = arith.constant 0 : index
    %33 = vector.load %arg4[%c1_19, %c0_20, %c0_21] : memref<4x16x16xbf16, #tpu.memory_space<vmem>>, vector<1x16x16xbf16>
    %34 = vector.shape_cast %33 : vector<1x16x16xbf16> to vector<16x16xbf16>
    %35 = arith.truncf %32 : vector<16x128xf32> to vector<16x128xbf16>
    %cst_22 = arith.constant dense<0.000000e+00> : vector<16x128xf32>
    %36 = tpu.matmul %34, %35, %cst_22 {dimension_numbers = #tpu.dot_dimension_numbers<[1], [0], [0], [1], [0, 0, 1, 1], [], []>} : vector<16x16xbf16>, vector<16x128xbf16>, vector<16x128xf32> -> vector<16x128xf32>
    %37 = arith.negf %36 : vector<16x128xf32>
    %38 = math.exp %37 : vector<16x128xf32>
    %cst_23 = arith.constant 1.000000e+00 : f32
    %39 = vector.broadcast %cst_23 : f32 to vector<16x128xf32>
    %40 = arith.addf %39, %38 : vector<16x128xf32>
    %41 = arith.divf %39, %40 : vector<16x128xf32>
    %42 = arith.truncf %41 : vector<16x128xf32> to vector<16x128xbf16>
    %cst_24 = arith.constant dense<0.000000e+00> : vector<16x128xf32>
    %43 = tpu.matmul %42, %1, %cst_24 {dimension_numbers = #tpu.dot_dimension_numbers<[1], [0], [0], [1], [0, 0, 1, 1], [], []>} : vector<16x128xbf16>, vector<128x128xbf16>, vector<16x128xf32> -> vector<16x128xf32>
    %c2 = arith.constant 2 : index
    %c0_25 = arith.constant 0 : index
    %c0_26 = arith.constant 0 : index
    %44 = vector.load %arg3[%c2, %c0_25, %c0_26] : memref<4x16x16xbf16, #tpu.memory_space<vmem>>, vector<1x16x16xbf16>
    %45 = vector.shape_cast %44 : vector<1x16x16xbf16> to vector<16x16xbf16>
    %46 = arith.truncf %43 : vector<16x128xf32> to vector<16x128xbf16>
    %cst_27 = arith.constant dense<0.000000e+00> : vector<16x128xf32>
    %47 = tpu.matmul %45, %46, %cst_27 {dimension_numbers = #tpu.dot_dimension_numbers<[1], [0], [0], [1], [0, 0, 1, 1], [], []>} : vector<16x16xbf16>, vector<16x128xbf16>, vector<16x128xf32> -> vector<16x128xf32>
    %48 = arith.negf %47 : vector<16x128xf32>
    %49 = math.exp %48 : vector<16x128xf32>
    %cst_28 = arith.constant 1.000000e+00 : f32
    %50 = vector.broadcast %cst_28 : f32 to vector<16x128xf32>
    %51 = arith.addf %50, %49 : vector<16x128xf32>
    %52 = arith.divf %50, %51 : vector<16x128xf32>
    %c2_29 = arith.constant 2 : index
    %c0_30 = arith.constant 0 : index
    %c0_31 = arith.constant 0 : index
    %53 = vector.load %arg4[%c2_29, %c0_30, %c0_31] : memref<4x16x16xbf16, #tpu.memory_space<vmem>>, vector<1x16x16xbf16>
    %54 = vector.shape_cast %53 : vector<1x16x16xbf16> to vector<16x16xbf16>
    %55 = arith.truncf %52 : vector<16x128xf32> to vector<16x128xbf16>
    %cst_32 = arith.constant dense<0.000000e+00> : vector<16x128xf32>
    %56 = tpu.matmul %54, %55, %cst_32 {dimension_numbers = #tpu.dot_dimension_numbers<[1], [0], [0], [1], [0, 0, 1, 1], [], []>} : vector<16x16xbf16>, vector<16x128xbf16>, vector<16x128xf32> -> vector<16x128xf32>
    %57 = arith.negf %56 : vector<16x128xf32>
    %58 = math.exp %57 : vector<16x128xf32>
    %cst_33 = arith.constant 1.000000e+00 : f32
    %59 = vector.broadcast %cst_33 : f32 to vector<16x128xf32>
    %60 = arith.addf %59, %58 : vector<16x128xf32>
    %61 = arith.divf %59, %60 : vector<16x128xf32>
    %62 = arith.truncf %61 : vector<16x128xf32> to vector<16x128xbf16>
    %cst_34 = arith.constant dense<0.000000e+00> : vector<16x128xf32>
    %63 = tpu.matmul %62, %1, %cst_34 {dimension_numbers = #tpu.dot_dimension_numbers<[1], [0], [0], [1], [0, 0, 1, 1], [], []>} : vector<16x128xbf16>, vector<128x128xbf16>, vector<16x128xf32> -> vector<16x128xf32>
    %c3 = arith.constant 3 : index
    %c0_35 = arith.constant 0 : index
    %c0_36 = arith.constant 0 : index
    %64 = vector.load %arg3[%c3, %c0_35, %c0_36] : memref<4x16x16xbf16, #tpu.memory_space<vmem>>, vector<1x16x16xbf16>
    %65 = vector.shape_cast %64 : vector<1x16x16xbf16> to vector<16x16xbf16>
    %66 = arith.truncf %63 : vector<16x128xf32> to vector<16x128xbf16>
    %cst_37 = arith.constant dense<0.000000e+00> : vector<16x128xf32>
    %67 = tpu.matmul %65, %66, %cst_37 {dimension_numbers = #tpu.dot_dimension_numbers<[1], [0], [0], [1], [0, 0, 1, 1], [], []>} : vector<16x16xbf16>, vector<16x128xbf16>, vector<16x128xf32> -> vector<16x128xf32>
    %68 = arith.negf %67 : vector<16x128xf32>
    %69 = math.exp %68 : vector<16x128xf32>
    %cst_38 = arith.constant 1.000000e+00 : f32
    %70 = vector.broadcast %cst_38 : f32 to vector<16x128xf32>
    %71 = arith.addf %70, %69 : vector<16x128xf32>
    %72 = arith.divf %70, %71 : vector<16x128xf32>
    %c3_39 = arith.constant 3 : index
    %c0_40 = arith.constant 0 : index
    %c0_41 = arith.constant 0 : index
    %73 = vector.load %arg4[%c3_39, %c0_40, %c0_41] : memref<4x16x16xbf16, #tpu.memory_space<vmem>>, vector<1x16x16xbf16>
    %74 = vector.shape_cast %73 : vector<1x16x16xbf16> to vector<16x16xbf16>
    %75 = arith.truncf %72 : vector<16x128xf32> to vector<16x128xbf16>
    %cst_42 = arith.constant dense<0.000000e+00> : vector<16x128xf32>
    %76 = tpu.matmul %74, %75, %cst_42 {dimension_numbers = #tpu.dot_dimension_numbers<[1], [0], [0], [1], [0, 0, 1, 1], [], []>} : vector<16x16xbf16>, vector<16x128xbf16>, vector<16x128xf32> -> vector<16x128xf32>
    %77 = arith.negf %76 : vector<16x128xf32>
    %78 = math.exp %77 : vector<16x128xf32>
    %cst_43 = arith.constant 1.000000e+00 : f32
    %79 = vector.broadcast %cst_43 : f32 to vector<16x128xf32>
    %80 = arith.addf %79, %78 : vector<16x128xf32>
    %81 = arith.divf %79, %80 : vector<16x128xf32>
    %82 = arith.truncf %81 : vector<16x128xf32> to vector<16x128xbf16>
    %c0_44 = arith.constant 0 : index
    %c0_45 = arith.constant 0 : index
    %c0_46 = arith.constant 0 : index
    %83 = vector.load %arg5[%c0_44, %c0_45, %c0_46] : memref<1x8x128xbf16, #tpu.memory_space<vmem>>, vector<1x8x128xbf16>
    %84 = vector.shape_cast %83 : vector<1x8x128xbf16> to vector<8x128xbf16>
    %85 = tpu.transpose %82, [1, 0] : vector<16x128xbf16> -> vector<128x16xbf16>
    %cst_47 = arith.constant dense<0.000000e+00> : vector<8x16xf32>
    %86 = tpu.matmul %84, %85, %cst_47 {dimension_numbers = #tpu.dot_dimension_numbers<[1], [0], [0], [1], [0, 0, 1, 1], [], []>} : vector<8x128xbf16>, vector<128x16xbf16>, vector<8x16xf32> -> vector<8x16xf32>
    %c0_48 = arith.constant 0 : index
    %c0_49 = arith.constant 0 : index
    %87 = vector.load %arg9[%c0_48, %c0_49] : memref<8x16xf32, #tpu.memory_space<vmem>>, vector<8x16xf32>
    tpu.vector_store %arg9[%c0_48, %c0_49], %86 {strides = array<i32>} : memref<8x16xf32, #tpu.memory_space<vmem>>, vector<8x16xf32>,
    %88 = arith.truncf %86 : vector<8x16xf32> to vector<8x16xbf16>
    %c0_50 = arith.constant 0 : index
    %c0_51 = arith.constant 0 : index
    %89 = vector.load %arg6[%c0_50, %c0_51] : memref<16x8xbf16, #tpu.memory_space<vmem>>, vector<16x8xbf16>
    %cst_52 = arith.constant dense<0.000000e+00> : vector<8x8xf32>
    %90 = tpu.matmul %88, %89, %cst_52 {dimension_numbers = #tpu.dot_dimension_numbers<[1], [0], [0], [1], [0, 0, 1, 1], [], []>} : vector<8x16xbf16>, vector<16x8xbf16>, vector<8x8xf32> -> vector<8x8xf32>
    %c0_53 = arith.constant 0 : index
    %c0_54 = arith.constant 0 : index
    %91 = vector.load %arg7[%c0_53, %c0_54] : memref<1x8xf32, #tpu.memory_space<vmem>>, vector<1x8xf32>
    %92 = vector.broadcast %91 : vector<1x8xf32> to vector<8x8xf32>
    %93 = arith.addf %90, %92 : vector<8x8xf32>
    %cst_55 = arith.constant dense<0xFF800000> : vector<8xf32>
    %94 = vector.multi_reduction <maximumf>, %93, %cst_55 [1] : vector<8x8xf32> to vector<8xf32>
    %95 = vector.shape_cast %94 : vector<8xf32> to vector<8x1xf32>
    %96 = vector.broadcast %95 : vector<8x1xf32> to vector<8x8xf32>
    %97 = arith.subf %93, %96 : vector<8x8xf32>
    %98 = math.exp %97 : vector<8x8xf32>
    %cst_56 = arith.constant dense<0.000000e+00> : vector<8xf32>
    %99 = vector.multi_reduction <add>, %98, %cst_56 [1] : vector<8x8xf32> to vector<8xf32>
    %100 = vector.shape_cast %99 : vector<8xf32> to vector<8x1xf32>
    %101 = math.log %100 : vector<8x1xf32>
    %102 = vector.broadcast %101 : vector<8x1xf32> to vector<8x8xf32>
    %103 = arith.subf %97, %102 : vector<8x8xf32>
    %c0_57 = arith.constant 0 : index
    %c0_58 = arith.constant 0 : index
    %104 = vector.load %arg8[%c0_57, %c0_58] : memref<8x8xf32, #tpu.memory_space<vmem>>, vector<8x8xf32>
    tpu.vector_store %arg8[%c0_57, %c0_58], %103 {strides = array<i32>} : memref<8x8xf32, #tpu.memory_space<vmem>>, vector<8x8xf32>,
    return
  }
  func.func @transform_0(%arg0: i32) -> (i32, i32) {
    %c0_i32 = arith.constant 0 : i32
    %c0_i32_0 = arith.constant 0 : i32
    return %c0_i32, %arg0 : i32, i32
  }
  func.func @transform_1(%arg0: i32) -> (i32, i32, i32) {
    %c0_i32 = arith.constant 0 : i32
    %c0_i32_0 = arith.constant 0 : i32
    %c0_i32_1 = arith.constant 0 : i32
    return %arg0, %c0_i32, %c0_i32_0 : i32, i32, i32
  }
  func.func @transform_2(%arg0: i32) -> (i32, i32, i32) {
    %c0_i32 = arith.constant 0 : i32
    %c0_i32_0 = arith.constant 0 : i32
    %c0_i32_1 = arith.constant 0 : i32
    %c0_i32_2 = arith.constant 0 : i32
    return %c0_i32, %c0_i32_0, %c0_i32_1 : i32, i32, i32
  }
  func.func @transform_3(%arg0: i32) -> (i32, i32, i32) {
    %c0_i32 = arith.constant 0 : i32
    %c0_i32_0 = arith.constant 0 : i32
    %c0_i32_1 = arith.constant 0 : i32
    %c0_i32_2 = arith.constant 0 : i32
    return %c0_i32, %c0_i32_0, %c0_i32_1 : i32, i32, i32
  }
  func.func @transform_4(%arg0: i32) -> (i32, i32, i32) {
    %c0_i32 = arith.constant 0 : i32
    %c0_i32_0 = arith.constant 0 : i32
    %c0_i32_1 = arith.constant 0 : i32
    return %arg0, %c0_i32, %c0_i32_0 : i32, i32, i32
  }
  func.func @transform_5(%arg0: i32) -> (i32, i32) {
    %c0_i32 = arith.constant 0 : i32
    %c0_i32_0 = arith.constant 0 : i32
    %c0_i32_1 = arith.constant 0 : i32
    return %c0_i32, %c0_i32_0 : i32, i32
  }
  func.func @transform_6(%arg0: i32) -> (i32, i32) {
    %c0_i32 = arith.constant 0 : i32
    %c0_i32_0 = arith.constant 0 : i32
    %c0_i32_1 = arith.constant 0 : i32
    return %c0_i32, %c0_i32_0 : i32, i32
  }
  func.func @transform_7(%arg0: i32) -> (i32, i32) {
    %c0_i32 = arith.constant 0 : i32
    %c0_i32_0 = arith.constant 0 : i32
    return %arg0, %c0_i32 : i32, i32
  }
  func.func @transform_8(%arg0: i32) -> (i32, i32) {
    %c0_i32 = arith.constant 0 : i32
    %c0_i32_0 = arith.constant 0 : i32
    return %arg0, %c0_i32 : i32, i32
  }
}

</mosaic_0001>

<bundles_post_ra>
// kernel: tpu_custom_call.1
= control target key start
LH: loop header
LB: loop body
LE: loop exit
PB: predicated region body
PF: predicated region fallthrough
CT: control target
= control target key end

     0   :  { %s2535_s0 = inlined_call_operand.hbm [shape: bf16[16,1024], index: 0, kind: input, shape index: {}]   ;;  %s2536_s1 = inlined_call_operand.hbm [shape: bf16[8,128,128], index: 1, kind: input, shape index: {}]   ;;  %s2537_s2 = inlined_call_operand.hbm [shape: bf16[4,16,16], index: 2, kind: input, shape index: {}]   ;;  %s2538_s3 = inlined_call_operand.hbm [shape: bf16[4,16,16], index: 3, kind: input, shape index: {}]   ;;  %s2539_s4 = inlined_call_operand.hbm [shape: bf16[8,8,128], index: 4, kind: input, shape index: {}]   ;;  %s2540_s5 = inlined_call_operand.vmem [shape: bf16[16,8], index: 5, kind: input, shape index: {}]   ;;  %s2541_s6 = inlined_call_operand.vmem [shape: f32[1,8], index: 6, kind: input, shape index: {}]   ;;  %s2542_s7 = inlined_call_operand.vmem [shape: f32[64,8], index: 7, kind: output, shape index: {0}]   ;;  %s2543_s8 = inlined_call_operand.vmem [shape: f32[64,16], index: 8, kind: output, shape index: {1}]  }
   0x1   :  { %2555 = sst [smem:[#allocation18_spill]] %s2535_s0 }
   0x2   :  { %2556 = sst [smem:[#allocation19_spill]] %s2536_s1 }
   0x3   :  { %2557 = sst [smem:[#allocation20_spill]] %s2537_s2 }
   0x4   :  { %2558 = sst [smem:[#allocation21_spill]] %s2538_s3 }
   0x5   :  { %14 = vsyncpa [#allocation3], 0 }
   0x6   :  { %16 = vsyncpa [#allocation3 + $0x1], 0 }
   0x7   :  { %17 = vsyncpa [#allocation5], 0 }
   0x8   :  { %19 = vsyncpa [#allocation5 + $0x1], 0 }
   0x9   :  { %20 = vsyncpa [#allocation8], 0  ;;  %s2137_s27 = smov 0   ;;  %s2139_s28 = smov 0  }
   0xa   :  { %s2141_s29 = smov 0   ;;  %s2143_s30 = smov 0  }
   0xb LB: > { %2559 = sst [smem:[#allocation15_spill]] %s2076_s29  ;;  %s2156_s9 = sadd.s32 4294967295, %s2080_s30   ;;  %s2080_s30 = sphi %s2143_s30, %s2584_s30   ;;  %s2076_s29 = sphi %s2141_s29, %s2586_s29   ;;  %s2072_s28 = sphi %s2139_s28, %s2588_s28   ;;  %s2068_s27 = sphi %s2137_s27, %s2587_s27  }
   0xc   : > { %s2159_s10 = sadd.s32 1, %s2080_s30   ;;  %s33_s12 = sadd.s32 1, %s2076_s29 }
   0xd   : > { %2560 = sst [smem:[#allocation16_spill]] %s2159_s10  ;;  %s30_s11 = ssub.s32 %s2080_s30, %s2159_s10 }
   0xe   : > { %p31_p0 = scmp.eq.s32.totalorder %s30_s11, 0  ;;  %p40_p1 = scmp.ne.s32.totalorder %s2076_s29, %s2072_s28 }
   0xf   : > { %p41_p2 = scmp.eq.s32.totalorder %s2080_s30, 0  ;;  %p46_p3 = scmp.ne.s32.totalorder %s2072_s28, %s2068_s27 }
  0x10   : > { %s2169_s13 = scalar_select %p31_p0, %s2076_s29, %s33_s12  }
  0x11   : > { %p2171_p4 = por %p41_p2, %p40_p1  ;;  %p2544_p5 = scmp.eq.s32.totalorder %s2156_s9, 0 }
  0x12   : > { %2561 = sst [smem:[#allocation17_spill]] %s2169_s13  ;;  %p1471_p6 = scmp.ge.s32.totalorder %s2080_s30, 1 }
  0x13   : > { %p245_p7 = scmp.lt.s32.totalorder %s2080_s30, 9  ;;  %p2180_p8 = por %p2544_p5, %p46_p3 }
  0x14   : > { %s2082_s17 = smov [#allocation6]   ;;  %p1766_p12 = scmp.lt.s32.totalorder %s2080_s30, 8 }
  0x15   : > { %s2563_s15 = scalar_select %p2180_p8, 1, 0 }
  0x16   : > { %p2184_p9 = pnand %p1471_p6, %p245_p7  ;;  %s257_s18 = sshll.u32 %s2082_s17, 4  ;;  %s258_s18 = int_to_ptr.vmem [resolvable:$true] %s257_s18 }
  0x17   : > { %s2199_s21 = sand.u32 1, %s2076_s29   ;;  %p2203_p13 = pnand %p1766_p12, %p2171_p4 }
  0x18   : > { %s2564_s16 = scalar_select %p2184_p9, 1, 0 }
  0x19   : > { %p1747_p10 = pneg %p2184_p9  ;;  %s1905_s23 = scalar_lea.vmem %s258_s18, 512 }
  0x1a   : > { %p1906_p1 = scmp.ne.s32.totalorder %s258_s18, %s1905_s23  ;;  %p1913_p6 = scmp.lt.s32.totalorder %s258_s18, %s258_s18 }
  0x1b   : > { %p2192_p11 = pnand %p1747_p10, %p2544_p5  ;;  %p1914_p7 = scmp.lt.s32.totalorder %s1905_s23, %s1905_s23 }
  0x1d   : > { %s2565_s19 = scalar_select %p2192_p11, 1, 0 }
  0x1e   : > { %p2549_p0 = pneg %p2192_p11  ;;  %p1915_p10 = por %p1914_p7, %p1913_p6 }
  0x20   : > { %p1908_p2 = pnand %p1906_p1, %p2549_p0 }
  0x22   : > { %p1909_p3 = pneg %p1908_p2 }
  0x24   : > { %p1916_p5 = pnand %p1915_p10, %p1909_p3 }
  0x26   : > { %1919 = shalt.err (!%p1916_p5)
}
  0x27   : > { %s2554_s24 = smov 64   ;;  %s2084_s25 = smov 4  }
  0x28   : > { %s2567_s2 = sld [smem:[#allocation20_spill]]  ;;  %s1475_s11 = sshll.u32 %s2199_s21, 3 }
  0x29   : > { %s2548_s12 = sshll.u32 %s2080_s30, 6  ;;  %s2568_s0 = sld [smem:[#allocation18_spill]] }
  0x2a   : > { %s294_s20 = scalar_lea.vmem [#allocation2], %s1475_s11  ;;  %s2569_s29 = sand.u32 1, %s2080_s30  }
  0x2b   : > { %s300_s13 = sshll.u32 %s294_s20, 4  ;;  %s2233_s10 = scalar_lea.sflag [#allocation3], %s2569_s29  ;;  %s2229_s13 = int_to_ptr.vmem [resolvable:$true] %s300_s13 }
  0x2c   : > { %p2239_p5 = pneg %p2203_p13 }
  0x2e   : > { %1750 = dma.hbm_to_vmem [thread:$0]  (!%p2192_p11), %s2567_s2, 512, %s258_s18, [#allocation5], %s2554_s24, %s2554_s24, %s2084_s25  }
  0x2f   : > { %s2227_s23 = scalar_lea.hbm %s2568_s0, %s2548_s12  ;;  %s1925_s20 = scalar_lea.hbm %s2568_s0, 1024 }
  0x30   : > { %s1920_s26 = scalar_lea.hbm %s2227_s23, 128  ;;  %p1926_p2 = scmp.lt.s32.totalorder %s2227_s23, %s2568_s0 }
  0x31   : > { %p1921_p4 = scmp.ne.s32.totalorder %s2227_s23, %s1920_s26  ;;  %p1927_p3 = scmp.lt.s32.totalorder %s1925_s20, %s1920_s26 }
  0x33   : > { %p1923_p12 = pnand %p2239_p5, %p1921_p4  ;;  %p1928_p6 = por %p1927_p3, %p1926_p2 }
  0x35   : > { %p1924_p1 = pneg %p1923_p12 }
  0x37   : > { %p1929_p7 = pnand %p1928_p6, %p1924_p1 }
  0x39   : > { %1932 = shalt.err (!%p1929_p7)
}
  0x3a   : > { %s1933_s29 = scalar_lea.vmem %s2229_s13, 128  ;;  %s2085_s12 = smov [#allocation2]  }
  0x3b   : > { %p1934_p10 = scmp.ne.s32.totalorder %s2229_s13, %s1933_s29  ;;  %s1938_s27 = sshll.u32 %s2085_s12, 4  ;;  %s1939_s27 = int_to_ptr.vmem [resolvable:$false] %s1938_s27 }
  0x3c   : > { %s1940_s14 = scalar_lea.vmem %s1939_s27, 256  ;;  %p1941_p0 = scmp.lt.s32.totalorder %s2229_s13, %s1939_s27 }
  0x3d   : > { %p1936_p4 = pnand %p1934_p10, %p2239_p5  ;;  %p1942_p8 = scmp.lt.s32.totalorder %s1940_s14, %s1933_s29 }
  0x3f   : > { %p1937_p12 = pneg %p1936_p4  ;;  %p1943_p9 = por %p1942_p8, %p1941_p0 }
  0x41   : > { %p1944_p11 = pnand %p1943_p9, %p1937_p12 }
  0x43   : > { %1947 = shalt.err (!%p1944_p11)
}
  0x44   : > { %s2086_s26 = smov 512   ;;  %s2087_s20 = smov [#allocation7]  }
  0x45   : > { %1757 = dma.hbm_to_vmem [thread:$0]  (!%p2203_p13), %s2227_s23, 128, %s2229_s13, %s2233_s10, %s2086_s26, %s2554_s24, %s2084_s25  }
  0x46   : > { %s270_s12 = sshll.u32 %s2087_s20, 4  ;;  %s1477_s11 = sshll.u32 %s2199_s21, 6  ;;  %s271_s12 = int_to_ptr.vmem [resolvable:$true] %s270_s12 }
  0x47   : > { %s1959_s17 = scalar_lea.vmem %s271_s12, 512  ;;  %p2571_p8 = scmp.ne.s32.totalorder %s2565_s19, 0 }
  0x48   : > { %p1960_p1 = scmp.ne.s32.totalorder %s271_s12, %s1959_s17  ;;  %p1967_p2 = scmp.lt.s32.totalorder %s271_s12, %s271_s12 }
  0x49   : > { %p2572_p9 = pneg %p2571_p8  ;;  %p1968_p3 = scmp.lt.s32.totalorder %s1959_s17, %s1959_s17 }
  0x4b   : > { %p1962_p11 = pnand %p1960_p1, %p2572_p9  ;;  %p1969_p6 = por %p1968_p3, %p1967_p2 }
  0x4d   : > { %p1963_p0 = pneg %p1962_p11 }
  0x4f   : > { %p1970_p7 = pnand %p1969_p6, %p1963_p0 }
  0x51   : > { %1973 = shalt.err (!%p1970_p7)
}
  0x52   : > { %s2573_s3 = sld [smem:[#allocation21_spill]]  ;;  %s1536_s29 = sshll.u32 %s2080_s30, 10 }
  0x53   : > { %s2574_s1 = sld [smem:[#allocation19_spill]]  ;;  %s314_s19 = scalar_lea.vmem [#allocation4], %s1477_s11 }
  0x54   : > { %s321_s20 = sshll.u32 %s314_s19, 4  ;;  %s1480_s17 = sshll.u32 %s2199_s21, 2  ;;  %s2282_s20 = int_to_ptr.vmem [resolvable:$true] %s321_s20 }
  0x55   : > { %s2575_s13 = sand.u32 1, %s2080_s30  }
  0x56   : > { %s311_s23 = scalar_lea.sflag [#allocation5], %s2575_s13 }
  0x58   : > { %1753 = dma.hbm_to_vmem [thread:$0]  (!%p2571_p8), %s2573_s3, 512, %s271_s12, [#allocation8], %s2554_s24, %s2554_s24, %s2084_s25  }
  0x59   : > { %s2280_s26 = scalar_lea.hbm %s2574_s1, %s1536_s29  ;;  %s1979_s29 = scalar_lea.hbm %s2574_s1, 8192 }
  0x5a   : > { %s1974_s0 = scalar_lea.hbm %s2280_s26, 1024  ;;  %p1980_p1 = scmp.lt.s32.totalorder %s2280_s26, %s2574_s1 }
  0x5b   : > { %p1975_p10 = scmp.ne.s32.totalorder %s2280_s26, %s1974_s0  ;;  %p1981_p8 = scmp.lt.s32.totalorder %s1979_s29, %s1974_s0 }
  0x5d   : > { %p1977_p4 = pnand %p1975_p10, %p2239_p5  ;;  %p1982_p9 = por %p1981_p8, %p1980_p1 }
  0x5f   : > { %p1978_p12 = pneg %p1977_p4 }
  0x61   : > { %p1983_p11 = pnand %p1982_p9, %p1978_p12 }
  0x63   : > { %1986 = shalt.err (!%p1983_p11)
}
  0x64   : > { %s1987_s11 = scalar_lea.vmem %s2282_s20, 1024  ;;  %s2088_s19 = smov [#allocation4]  }
  0x65   : > { %p1988_p0 = scmp.ne.s32.totalorder %s2282_s20, %s1987_s11  ;;  %s1992_s24 = sshll.u32 %s2088_s19, 4  ;;  %s1993_s24 = int_to_ptr.vmem [resolvable:$false] %s1992_s24 }
  0x66   : > { %s1994_s13 = scalar_lea.vmem %s1993_s24, 2048  ;;  %p1995_p6 = scmp.lt.s32.totalorder %s2282_s20, %s1993_s24 }
  0x67   : > { %p1990_p2 = pnand %p1988_p0, %p2239_p5  ;;  %p1996_p7 = scmp.lt.s32.totalorder %s1994_s13, %s1987_s11 }
  0x69   : > { %p1991_p3 = pneg %p1990_p2  ;;  %p1997_p10 = por %p1996_p7, %p1995_p6 }
  0x6b   : > { %p1998_p4 = pnand %p1997_p10, %p1991_p3 }
  0x6d   : > { %2001 = shalt.err (!%p1998_p4)
}
  0x6e   : > { %s2576_s0 = smov 64   ;;  %s2577_s12 = sshll.u32 %s2080_s30, 6 }
  0x6f   : > { %1760 = dma.hbm_to_vmem [thread:$0]  (!%p2203_p13), %s2280_s26, 1024, %s2282_s20, %s311_s23, %s2576_s0, %s2576_s0, %s2084_s25  }
  0x70   : > { %s340_s14 = scalar_lea.hbm %s2539_s4, %s2577_s12  ;;  %s335_s11 = scalar_lea.vmem [#allocation9], %s1480_s17 }
  0x71   : > { %s342_s19 = sshll.u32 %s335_s11, 4  ;;  %s2002_s24 = scalar_lea.hbm %s340_s14, 64  ;;  %s343_s19 = int_to_ptr.vmem [resolvable:$true] %s342_s19 }
  0x72   : > { %p2003_p12 = scmp.ne.s32.totalorder %s340_s14, %s2002_s24  ;;  %s2007_s2 = scalar_lea.hbm %s2539_s4, 512 }
  0x73   : > { %p2008_p9 = scmp.lt.s32.totalorder %s340_s14, %s2539_s4  ;;  %p2009_p11 = scmp.lt.s32.totalorder %s2007_s2, %s2002_s24 }
  0x74   : > { %p2005_p1 = pnand %p2003_p12, %p2239_p5 }
  0x75   : > { %p2010_p0 = por %p2009_p11, %p2008_p9 }
  0x76   : > { %p2006_p8 = pneg %p2005_p1 }
  0x78   : > { %p2011_p2 = pnand %p2010_p0, %p2006_p8 }
  0x7a   : > { %2014 = shalt.err (!%p2011_p2)
}
  0x7b   : > { %s2015_s30 = scalar_lea.vmem %s343_s19, 64  ;;  %s2089_s21 = smov [#allocation9]  }
  0x7c   : > { %p2016_p3 = scmp.ne.s32.totalorder %s343_s19, %s2015_s30  ;;  %s2020_s26 = sshll.u32 %s2089_s21, 4  ;;  %s2021_s26 = int_to_ptr.vmem [resolvable:$false] %s2020_s26 }
  0x7d   : > { %s2022_s20 = scalar_lea.vmem %s2021_s26, 128  ;;  %p2023_p10 = scmp.lt.s32.totalorder %s343_s19, %s2021_s26 }
  0x7e   : > { %p2018_p6 = pnand %p2016_p3, %p2239_p5  ;;  %p2024_p4 = scmp.lt.s32.totalorder %s2022_s20, %s2015_s30 }
  0x80   : > { %p2019_p7 = pneg %p2018_p6  ;;  %p2025_p12 = por %p2024_p4, %p2023_p10 }
  0x82   : > { %p2026_p1 = pnand %p2025_p12, %p2019_p7 }
  0x84   : > { %2029 = shalt.err (!%p2026_p1)
}
  0x85   : > { %1763 = dma.hbm_to_vmem [thread:$0]  (!%p2203_p13), %s340_s14, 64, %s343_s19, %s2233_s10  }
  0x86   : > { %p2578_p8 = scmp.ne.s32.totalorder %s2564_s16, 0 }
  0x87   : > { %s353_s1 = sand.u32 (!%p2578_p8), 1, %s2156_s9   ;;  %s355_s2 = sand.u32 (!%p2578_p8), 1, %s2072_s28  }
  0x88   : > { %351 = sbr.rel (%p2578_p8) target bundleno = 3569 (0xdf1), region = 48  ;;  %s1483_s3 = sshll.u32 (!%p2578_p8), %s355_s2, 3 }
  0x89   : > { %s354_s18 = scalar_lea.sflag (!%p2578_p8), [#allocation3], %s353_s1  ;;  %s2334_s17 = scalar_lea.vmem (!%p2578_p8), [#allocation2], %s1483_s3 }
  0x8a   : > { %p2579_p5 = scmp.ne.s32.totalorder (!%p2578_p8), %s2563_s15, 0 }
  0x8d   : > { %2047 = dma.done.wait (%p2579_p5), %s354_s18, 128  }
  0x8e   : > { %2049 = vsyncadd (%p2579_p5), %s354_s18, 4294967168  ;;  %s1484_s22 = sshll.u32 %s355_s2, 6  ;;  %s363_s10 = scalar_lea.sflag [#allocation5], %s353_s1 }
  0x8f   : > { %s2340_s23 = scalar_lea.vmem [#allocation4], %s1484_s22 }
  0x90   : > { %2051 = dma.done.wait (%p2579_p5), %s363_s10, 1024  }
  0x91   : > { %2053 = vsyncadd (%p2579_p5), %s363_s10, 4294966272  ;;  %p2580_p13 = scmp.eq.s32.totalorder %s2156_s9, 0 }
  0x93   : > { %2055 = dma.done.wait (%p2580_p13), [#allocation5], 512   ;;  %p2581_p9 = pmov %p2580_p13 }
  0x95   : > { %2057 = vsyncadd (%p2581_p9), [#allocation5], 4294966784  ;;  %p2582_p11 = pmov %p2581_p9 }
  0x96   : > { %p2583_p0 = pmov %p2581_p9 }
  0x97   : > { %2059 = dma.done.wait (%p2582_p11), [#allocation8], 512  }
  0x98   : > { %2061 = vsyncadd (%p2583_p0), [#allocation8], 4294966784  ;;  %s1487_s16 = sshll.u32 %s355_s2, 2 }
  0x99   : > { %s2354_s0 = scalar_lea.vmem [#allocation9], %s1487_s16 }
  0x9a   : > { %2063 = dma.done.wait (%p2579_p5), %s354_s18, 64  }
  0x9b   : > { %2065 = vsyncadd (%p2579_p5), %s354_s18, 4294967232  ;;  %v2090_v0 = vmov 0.0   ;;  %vm2091_vm0 = vmmov 0   ;;  %v2367_v1 = vld [vmem:[%s2340_s23 + $0x38] sm:$0xff]   ;;  %v2371_v2 = vld [vmem:[%s2340_s23 + $0x30] sm:$0xff]   ;;  %vm559_vm1 = vcmask 130048  }
  0x9c   : > { %1593 = vmatprep.subr.bf16.mxu0 %v2090_v0  ;;  %1609 = vmatprep.mubr.msk.bf16.mxu0 %vm2091_vm0, %v2090_v0  ;;  %v2376_v3 = vld [vmem:[%s2340_s23 + $0x28] sm:$0xff]   ;;  %v2380_v4 = vld [vmem:[%s2340_s23 + $0x20] sm:$0xff]   ;;  %v2385_v5 = vld [vmem:[%s2340_s23 + $0x18] sm:$0xff]   ;;  %p429_p2 = scmp.lt.s32.totalorder %s2156_s9, 7  ;;  %vm1298_vm2 = vcmask 64512  }
  0x9d   : > { %1613 = vmatprep.subr.bf16.mxu1 %v2090_v0  ;;  %1615 = vmatprep.mubr.msk.bf16.mxu1 %vm2091_vm0, %v2090_v0  ;;  %v2391_v6 = vld [vmem:[%s2340_s23 + $0x10] sm:$0xff]   ;;  %v2396_v7 = vld [vmem:[%s2340_s23 + $0x8] sm:$0xff]   ;;  %v2401_v8 = vld [vmem:[%s2340_s23] sm:$0xff]  }
  0x9e   : > { %1594 = vmatpush3.bf16.msra.mxu0 %v2367_v1  ;;  %v1816_v9 = vld [vmem:[%s2334_s17] sm:$0xff]   ;;  %v1817_v15 = vld [vmem:[#allocation6] sm:$0xff]   ;;  %v1819_v48 = vld [vmem:[#allocation6 + $0x8] sm:$0xff]   ;;  %s2590_s9 = smov (!%p429_p2, %s2156_s9), 7 }
  0x9f   : > { %1595 = vmatprep.subr.bf16.mxu0 %v2090_v0  ;;  %v1818_v29 = vld [vmem:[#allocation7] sm:$0xff]   ;;  %v1820_v62 = vld [vmem:[#allocation7 + $0x8] sm:$0xff]   ;;  %s1488_s29 = sshll.u32 %s2590_s9, 3 }
  0xa0   : > { %s436_s11 = scalar_lea.vmem %s2543_s8, %s1488_s29  ;;  %s432_s30 = scalar_lea.vmem %s2542_s7, %s1488_s29 }
  0xa2   : > { %1596 = vmatpush3.bf16.msra.mxu0 %v2371_v2 }
  0xa3   : > { %1597 = vmatprep.subr.bf16.mxu0 %v2090_v0 }
  0xa6   : > { %1598 = vmatpush3.bf16.msra.mxu0 %v2376_v3 }
  0xa7   : > { %1599 = vmatprep.subr.bf16.mxu0 %v2090_v0 }
  0xaa   : > { %1600 = vmatpush3.bf16.msra.mxu0 %v2380_v4 }
  0xab   : > { %1601 = vmatprep.subr.bf16.mxu0 %v2090_v0 }
  0xae   : > { %1602 = vmatpush3.bf16.msra.mxu0 %v2385_v5 }
  0xaf   : > { %1603 = vmatprep.subr.bf16.mxu0 %v2090_v0 }
  0xb2   : > { %1604 = vmatpush3.bf16.msra.mxu0 %v2391_v6 }
  0xb3   : > { %1605 = vmatprep.subr.bf16.mxu0 %v2090_v0 }
  0xb6   : > { %1606 = vmatpush3.bf16.msra.mxu0 %v2396_v7 }
  0xb7   : > { %1607 = vmatprep.subr.bf16.mxu0 %v2090_v0 }
  0xba   : > { %1608 = vmatpush3.bf16.msra.mxu0 %v2401_v8 }
  0xbb   : > { %1645 = vmatprep.subr.bf16.mxu0 %v2090_v0 }
  0xbd   : > { %1610 = vmatmul.mubr.bf16.vlgmr.msra.gmra.mxu0 %v1816_v9 }
  0xbe   : > { %1647 = vmatprep.mubr.msk.bf16.mxu0 %vm2091_vm0, %v2090_v0 }
 0x17d   : > { %v544_v10 = vpop.f32.mrf.mxu0 }
 0x17f   : > { %v1611_v11 = vpop.f32.mrf.mxu0 }
 0x181   : > { %v547_v12 = vpop.f32.mrf.mxu0 }
 0x182   : > { %v553_v13 = vpack.c.bf16 %v547_v12, %v544_v10 }
 0x183   : > { %v1612_v14 = vpop.f32.mrf.mxu0 }
 0x184   : > { %1614 = vmatpush3.bf16.msra.mxu1 %v553_v13 }
 0x185   : > { %1619 = vmatprep.subr.bf16.mxu1 %v2090_v0 }
 0x187   : > { %1616 = vmatmul.mubr.msk.bf16.vlgmr.msra.gmra.mxu1 %vm559_vm1, %v1817_v15 }
 0x188   : > { %1621 = vmatprep.mubr.msk.bf16.mxu1 %vm2091_vm0, %v2090_v0 }
 0x247   : > { %v597_v16 = vpop.f32.mrf.mxu1 }
 0x248   : > { %v1501_v17 = vmul.f32 -1.442695, %v597_v16 }
 0x249   : > { %v1617_v18 = vpop.f32.mrf.mxu1 }
 0x24a   : > { %1826 = vpow2.f32 %v1501_v17 }
 0x24b   : > { %v600_v19 = vpop.f32.mrf.mxu1 }
 0x24c   : > { %v1502_v20 = vmul.f32 -1.442695, %v600_v19 }
 0x24d   : > { %v1618_v21 = vpop.f32.mrf.mxu1 }
 0x24e   : > { %1828 = vpow2.f32 %v1502_v20 }
 0x257   : > { %v1827_v22 = vpop.eup %1826 }
 0x258   : > { %v610_v23 = vadd.f32 1.0, %v1827_v22 }
 0x25a   : > { %1830 = vrcp.f32 %v610_v23 }
 0x25b   : > { %v1829_v24 = vpop.eup %1828 }
 0x25c   : > { %v611_v25 = vadd.f32 1.0, %v1829_v24 }
 0x25e   : > { %1832 = vrcp.f32 %v611_v25 }
 0x267   : > { %v1831_v26 = vpop.eup %1830 }
 0x26b   : > { %v1833_v27 = vpop.eup %1832 }
 0x26c   : > { %v618_v28 = vpack.c.bf16 %v1833_v27, %v1831_v26  ;;  %v1821_v26 = vld [vmem:[#allocation6 + $0x10] sm:$0xff]  }
 0x26e   : > { %1620 = vmatpush3.bf16.msra.mxu1 %v618_v28 }
 0x26f   : > { %1625 = vmatprep.subr.bf16.mxu1 %v2090_v0 }
 0x271   : > { %1622 = vmatmul.mubr.msk.bf16.vlgmr.msra.gmra.mxu1 %vm559_vm1, %v1818_v29 }
 0x272   : > { %1626 = vmatpush3.bf16.msra.mxu1 %v2367_v1  ;;  %1641 = vmatprep.mubr.msk.bf16.mxu1 %vm2091_vm0, %v2090_v0 }
 0x273   : > { %1627 = vmatprep.subr.bf16.mxu1 %v2090_v0 }
 0x276   : > { %1628 = vmatpush3.bf16.msra.mxu1 %v2371_v2 }
 0x277   : > { %1629 = vmatprep.subr.bf16.mxu1 %v2090_v0 }
 0x27a   : > { %1630 = vmatpush3.bf16.msra.mxu1 %v2376_v3 }
 0x27b   : > { %1631 = vmatprep.subr.bf16.mxu1 %v2090_v0 }
 0x27e   : > { %1632 = vmatpush3.bf16.msra.mxu1 %v2380_v4 }
 0x27f   : > { %1633 = vmatprep.subr.bf16.mxu1 %v2090_v0 }
 0x282   : > { %1634 = vmatpush3.bf16.msra.mxu1 %v2385_v5 }
 0x283   : > { %1635 = vmatprep.subr.bf16.mxu1 %v2090_v0 }
 0x286   : > { %1636 = vmatpush3.bf16.msra.mxu1 %v2391_v6 }
 0x287   : > { %1637 = vmatprep.subr.bf16.mxu1 %v2090_v0 }
 0x28a   : > { %1638 = vmatpush3.bf16.msra.mxu1 %v2396_v7 }
 0x28b   : > { %1639 = vmatprep.subr.bf16.mxu1 %v2090_v0 }
 0x28e   : > { %1640 = vmatpush3.bf16.msra.mxu1 %v2401_v8 }
 0x28f   : > { %1657 = vmatprep.subr.bf16.mxu1 %v2090_v0 }
 0x331   : > { %v661_v30 = vpop.f32.mrf.mxu1 }
 0x332   : > { %v1505_v31 = vmul.f32 -1.442695, %v661_v30 }
 0x333   : > { %v1623_v32 = vpop.f32.mrf.mxu1 }
 0x334   : > { %1834 = vpow2.f32 %v1505_v31 }
 0x335   : > { %v664_v33 = vpop.f32.mrf.mxu1 }
 0x336   : > { %v1506_v34 = vmul.f32 -1.442695, %v664_v33 }
 0x337   : > { %v1624_v35 = vpop.f32.mrf.mxu1 }
 0x338   : > { %1836 = vpow2.f32 %v1506_v34 }
 0x341   : > { %v1835_v36 = vpop.eup %1834 }
 0x342   : > { %v674_v37 = vadd.f32 1.0, %v1835_v36 }
 0x344   : > { %1838 = vrcp.f32 %v674_v37 }
 0x345   : > { %v1837_v38 = vpop.eup %1836 }
 0x346   : > { %v675_v39 = vadd.f32 1.0, %v1837_v38 }
 0x348   : > { %1840 = vrcp.f32 %v675_v39 }
 0x351   : > { %v1839_v40 = vpop.eup %1838 }
 0x355   : > { %v1841_v41 = vpop.eup %1840 }
 0x356   : > { %v680_v42 = vpack.c.bf16 %v1841_v41, %v1839_v40  ;;  %v1822_v40 = vld [vmem:[#allocation7 + $0x10] sm:$0xff]  }
 0x358   : > { %1642 = vmatmul.mubr.bf16.vlgmr.msra.gmra.mxu1 %v680_v42 }
 0x359   : > { %1658 = vmatpush3.bf16.msra.mxu1 %v2367_v1  ;;  %1673 = vmatprep.mubr.msk.bf16.mxu1 %vm2091_vm0, %v2090_v0 }
 0x35a   : > { %1659 = vmatprep.subr.bf16.mxu1 %v2090_v0 }
 0x35d   : > { %1660 = vmatpush3.bf16.msra.mxu1 %v2371_v2 }
 0x35e   : > { %1661 = vmatprep.subr.bf16.mxu1 %v2090_v0 }
 0x361   : > { %1662 = vmatpush3.bf16.msra.mxu1 %v2376_v3 }
 0x362   : > { %1663 = vmatprep.subr.bf16.mxu1 %v2090_v0 }
 0x365   : > { %1664 = vmatpush3.bf16.msra.mxu1 %v2380_v4 }
 0x366   : > { %1665 = vmatprep.subr.bf16.mxu1 %v2090_v0 }
 0x369   : > { %1666 = vmatpush3.bf16.msra.mxu1 %v2385_v5 }
 0x36a   : > { %1667 = vmatprep.subr.bf16.mxu1 %v2090_v0 }
 0x36d   : > { %1668 = vmatpush3.bf16.msra.mxu1 %v2391_v6 }
 0x36e   : > { %1669 = vmatprep.subr.bf16.mxu1 %v2090_v0 }
 0x371   : > { %1670 = vmatpush3.bf16.msra.mxu1 %v2396_v7 }
 0x372   : > { %1671 = vmatprep.subr.bf16.mxu1 %v2090_v0 }
 0x375   : > { %1672 = vmatpush3.bf16.msra.mxu1 %v2401_v8 }
 0x376   : > { %1709 = vmatprep.subr.bf16.mxu1 %v2090_v0 }
 0x418   : > { %v715_v43 = vpop.f32.mrf.mxu1 }
 0x41a   : > { %v1643_v44 = vpop.f32.mrf.mxu1 }
 0x41c   : > { %v718_v45 = vpop.f32.mrf.mxu1 }
 0x41d   : > { %v725_v46 = vpack.c.bf16 %v718_v45, %v715_v43 }
 0x41e   : > { %v1644_v47 = vpop.f32.mrf.mxu1 }
 0x41f   : > { %1646 = vmatpush3.bf16.msra.mxu0 %v725_v46 }
 0x420   : > { %1651 = vmatprep.subr.bf16.mxu0 %v2090_v0 }
 0x422   : > { %1648 = vmatmul.mubr.msk.bf16.vlgmr.msra.gmra.mxu0 %vm559_vm1, %v1819_v48 }
 0x423   : > { %1653 = vmatprep.mubr.msk.bf16.mxu0 %vm2091_vm0, %v2090_v0 }
 0x4e2   : > { %v768_v49 = vpop.f32.mrf.mxu0 }
 0x4e3   : > { %v1509_v50 = vmul.f32 -1.442695, %v768_v49 }
 0x4e4   : > { %v1649_v51 = vpop.f32.mrf.mxu0 }
 0x4e5   : > { %1842 = vpow2.f32 %v1509_v50  ;;  %v1823_v51 = vld [vmem:[#allocation6 + $0x18] sm:$0xff]  }
 0x4e6   : > { %v771_v52 = vpop.f32.mrf.mxu0 }
 0x4e7   : > { %v1510_v53 = vmul.f32 -1.442695, %v771_v52 }
 0x4e8   : > { %v1650_v54 = vpop.f32.mrf.mxu0 }
 0x4e9   : > { %1844 = vpow2.f32 %v1510_v53 }
 0x4f2   : > { %v1843_v55 = vpop.eup %1842 }
 0x4f3   : > { %v781_v56 = vadd.f32 1.0, %v1843_v55 }
 0x4f5   : > { %1846 = vrcp.f32 %v781_v56 }
 0x4f6   : > { %v1845_v57 = vpop.eup %1844 }
 0x4f7   : > { %v782_v58 = vadd.f32 1.0, %v1845_v57 }
 0x4f9   : > { %1848 = vrcp.f32 %v782_v58 }
 0x502   : > { %v1847_v59 = vpop.eup %1846 }
 0x506   : > { %v1849_v60 = vpop.eup %1848 }
 0x507   : > { %v790_v61 = vpack.c.bf16 %v1849_v60, %v1847_v59 }
 0x509   : > { %1652 = vmatpush3.bf16.msra.mxu0 %v790_v61 }
 0x50a   : > { %1677 = vmatprep.subr.bf16.mxu0 %v2090_v0 }
 0x50c   : > { %1654 = vmatmul.mubr.msk.bf16.vlgmr.msra.gmra.mxu0 %vm559_vm1, %v1820_v62 }
 0x50d   : > { %1679 = vmatprep.mubr.msk.bf16.mxu0 %vm2091_vm0, %v2090_v0 }
 0x5cc   : > { %v833_v63 = vpop.f32.mrf.mxu0 }
 0x5cd   : > { %v1513_v9 = vmul.f32 -1.442695, %v833_v63 }
 0x5ce   : > { %v1655_v10 = vpop.f32.mrf.mxu0 }
 0x5cf   : > { %1850 = vpow2.f32 %v1513_v9  ;;  %v1824_v10 = vld [vmem:[#allocation7 + $0x18] sm:$0xff]  }
 0x5d0   : > { %v836_v11 = vpop.f32.mrf.mxu0 }
 0x5d1   : > { %v1514_v12 = vmul.f32 -1.442695, %v836_v11 }
 0x5d2   : > { %v1656_v13 = vpop.f32.mrf.mxu0 }
 0x5d3   : > { %1852 = vpow2.f32 %v1514_v12 }
 0x5dc   : > { %v1851_v14 = vpop.eup %1850 }
 0x5dd   : > { %v846_v15 = vadd.f32 1.0, %v1851_v14 }
 0x5df   : > { %1854 = vrcp.f32 %v846_v15 }
 0x5e0   : > { %v1853_v16 = vpop.eup %1852 }
 0x5e1   : > { %v847_v17 = vadd.f32 1.0, %v1853_v16 }
 0x5e3   : > { %1856 = vrcp.f32 %v847_v17 }
 0x5ec   : > { %v1855_v18 = vpop.eup %1854 }
 0x5f0   : > { %v1857_v19 = vpop.eup %1856 }
 0x5f1   : > { %v852_v20 = vpack.c.bf16 %v1857_v19, %v1855_v18 }
 0x5f3   : > { %1674 = vmatmul.mubr.bf16.vlgmr.msra.gmra.mxu1 %v852_v20 }
 0x5f4   : > { %1711 = vmatprep.mubr.msk.bf16.mxu1 %vm2091_vm0, %v2090_v0 }
 0x6b3   : > { %v887_v21 = vpop.f32.mrf.mxu1 }
 0x6b5   : > { %v1675_v22 = vpop.f32.mrf.mxu1 }
 0x6b7   : > { %v890_v23 = vpop.f32.mrf.mxu1 }
 0x6b8   : > { %v897_v24 = vpack.c.bf16 %v890_v23, %v887_v21  ;;  %v1197_v23 = vld [vmem:[%s2354_s0] sm:$0xf] }
 0x6b9   : > { %v1676_v25 = vpop.f32.mrf.mxu1 }
 0x6ba   : > { %1678 = vmatpush3.bf16.msra.mxu0 %v897_v24  ;;  %v1825_v24 = vld [vmem:[%s2540_s5] sm:$0xff]  }
 0x6bb   : > { %1683 = vmatprep.subr.bf16.mxu0 %v2090_v0 }
 0x6bd   : > { %1680 = vmatmul.mubr.msk.bf16.vlgmr.msra.gmra.mxu0 %vm559_vm1, %v1821_v26 }
 0x6be   : > { %1685 = vmatprep.mubr.msk.bf16.mxu0 %vm2091_vm0, %v2090_v0 }
 0x77d   : > { %v940_v27 = vpop.f32.mrf.mxu0 }
 0x77e   : > { %v1517_v28 = vmul.f32 -1.442695, %v940_v27 }
 0x77f   : > { %v1681_v29 = vpop.f32.mrf.mxu0 }
 0x780   : > { %1858 = vpow2.f32 %v1517_v28 }
 0x781   : > { %v943_v30 = vpop.f32.mrf.mxu0 }
 0x782   : > { %v1518_v31 = vmul.f32 -1.442695, %v943_v30  ;;  %v1531_v30 = vld [vmem:[%s2541_s6] ss:$0 sm:$0xff] }
 0x783   : > { %v1682_v32 = vpop.f32.mrf.mxu0 }
 0x784   : > { %1860 = vpow2.f32 %v1518_v31 }
 0x78d   : > { %v1859_v33 = vpop.eup %1858 }
 0x78e   : > { %v953_v34 = vadd.f32 1.0, %v1859_v33 }
 0x790   : > { %1862 = vrcp.f32 %v953_v34 }
 0x791   : > { %v1861_v35 = vpop.eup %1860 }
 0x792   : > { %v954_v36 = vadd.f32 1.0, %v1861_v35 }
 0x794   : > { %1864 = vrcp.f32 %v954_v36 }
 0x79d   : > { %v1863_v37 = vpop.eup %1862 }
 0x7a1   : > { %v1865_v38 = vpop.eup %1864 }
 0x7a2   : > { %v962_v39 = vpack.c.bf16 %v1865_v38, %v1863_v37 }
 0x7a4   : > { %1684 = vmatpush3.bf16.msra.mxu0 %v962_v39 }
 0x7a5   : > { %1689 = vmatprep.subr.bf16.mxu0 %v2090_v0 }
 0x7a7   : > { %1686 = vmatmul.mubr.msk.bf16.vlgmr.msra.gmra.mxu0 %vm559_vm1, %v1822_v40 }
 0x7a8   : > { %1690 = vmatpush3.bf16.msra.mxu0 %v2367_v1  ;;  %1705 = vmatprep.mubr.msk.bf16.mxu0 %vm2091_vm0, %v2090_v0 }
 0x7a9   : > { %1691 = vmatprep.subr.bf16.mxu0 %v2090_v0 }
 0x7ac   : > { %1692 = vmatpush3.bf16.msra.mxu0 %v2371_v2 }
 0x7ad   : > { %1693 = vmatprep.subr.bf16.mxu0 %v2090_v0 }
 0x7b0   : > { %1694 = vmatpush3.bf16.msra.mxu0 %v2376_v3 }
 0x7b1   : > { %1695 = vmatprep.subr.bf16.mxu0 %v2090_v0 }
 0x7b4   : > { %1696 = vmatpush3.bf16.msra.mxu0 %v2380_v4 }
 0x7b5   : > { %1697 = vmatprep.subr.bf16.mxu0 %v2090_v0 }
 0x7b8   : > { %1698 = vmatpush3.bf16.msra.mxu0 %v2385_v5 }
 0x7b9   : > { %1699 = vmatprep.subr.bf16.mxu0 %v2090_v0 }
 0x7bc   : > { %1700 = vmatpush3.bf16.msra.mxu0 %v2391_v6 }
 0x7bd   : > { %1701 = vmatprep.subr.bf16.mxu0 %v2090_v0 }
 0x7c0   : > { %1702 = vmatpush3.bf16.msra.mxu0 %v2396_v7 }
 0x7c1   : > { %1703 = vmatprep.subr.bf16.mxu0 %v2090_v0 }
 0x7c4   : > { %1704 = vmatpush3.bf16.msra.mxu0 %v2401_v8 }
 0x7c5   : > { %1727 = vmatprep.subr.bf16.mxu0 %v2090_v0 }
 0x867   : > { %v1005_v1 = vpop.f32.mrf.mxu0 }
 0x868   : > { %v1521_v2 = vmul.f32 -1.442695, %v1005_v1 }
 0x869   : > { %v1687_v3 = vpop.f32.mrf.mxu0 }
 0x86a   : > { %1866 = vpow2.f32 %v1521_v2 }
 0x86b   : > { %v1008_v4 = vpop.f32.mrf.mxu0 }
 0x86c   : > { %v1522_v5 = vmul.f32 -1.442695, %v1008_v4 }
 0x86d   : > { %v1688_v41 = vpop.f32.mrf.mxu0 }
 0x86e   : > { %1868 = vpow2.f32 %v1522_v5 }
 0x877   : > { %v1867_v42 = vpop.eup %1866 }
 0x878   : > { %v1018_v6 = vadd.f32 1.0, %v1867_v42 }
 0x87a   : > { %1870 = vrcp.f32 %v1018_v6 }
 0x87b   : > { %v1869_v43 = vpop.eup %1868 }
 0x87c   : > { %v1019_v44 = vadd.f32 1.0, %v1869_v43 }
 0x87e   : > { %1872 = vrcp.f32 %v1019_v44 }
 0x887   : > { %v1871_v7 = vpop.eup %1870 }
 0x88b   : > { %v1873_v45 = vpop.eup %1872 }
 0x88c   : > { %v1024_v46 = vpack.c.bf16 %v1873_v45, %v1871_v7 }
 0x88e   : > { %1706 = vmatmul.mubr.bf16.vlgmr.msra.gmra.mxu0 %v1024_v46 }
 0x88f   : > { %1729 = vmatprep.mubr.msk.bf16.mxu0 %vm2091_vm0, %v2090_v0  ;;  %1728 = vmatpush3.bf16.msra.mxu0 %v1825_v24 }
 0x94e   : > { %v1059_v8 = vpop.f32.mrf.mxu0 }
 0x950   : > { %v1707_v47 = vpop.f32.mrf.mxu0 }
 0x952   : > { %v1062_v48 = vpop.f32.mrf.mxu0 }
 0x953   : > { %v1069_v49 = vpack.c.bf16 %v1062_v48, %v1059_v8 }
 0x954   : > { %v1708_v50 = vpop.f32.mrf.mxu0 }
 0x955   : > { %1710 = vmatpush3.bf16.msra.mxu1 %v1069_v49 }
 0x956   : > { %1715 = vmatprep.subr.bf16.mxu1 %v2090_v0 }
 0x958   : > { %1712 = vmatmul.mubr.msk.bf16.vlgmr.msra.gmra.mxu1 %vm559_vm1, %v1823_v51 }
 0x959   : > { %1717 = vmatprep.mubr.msk.bf16.mxu1 %vm2091_vm0, %v2090_v0 }
 0xa18   : > { %v1112_v52 = vpop.f32.mrf.mxu1 }
 0xa19   : > { %v1525_v53 = vmul.f32 -1.442695, %v1112_v52 }
 0xa1a   : > { %v1713_v54 = vpop.f32.mrf.mxu1 }
 0xa1b   : > { %1874 = vpow2.f32 %v1525_v53 }
 0xa1c   : > { %v1115_v55 = vpop.f32.mrf.mxu1 }
 0xa1d   : > { %v1526_v56 = vmul.f32 -1.442695, %v1115_v55 }
 0xa1e   : > { %v1714_v57 = vpop.f32.mrf.mxu1 }
 0xa1f   : > { %1876 = vpow2.f32 %v1526_v56 }
 0xa28   : > { %v1875_v58 = vpop.eup %1874 }
 0xa29   : > { %v1125_v59 = vadd.f32 1.0, %v1875_v58 }
 0xa2b   : > { %1878 = vrcp.f32 %v1125_v59 }
 0xa2c   : > { %v1877_v60 = vpop.eup %1876 }
 0xa2d   : > { %v1126_v61 = vadd.f32 1.0, %v1877_v60 }
 0xa2f   : > { %1880 = vrcp.f32 %v1126_v61 }
 0xa38   : > { %v1879_v62 = vpop.eup %1878 }
 0xa3c   : > { %v1881_v63 = vpop.eup %1880 }
 0xa3d   : > { %v1134_v9 = vpack.c.bf16 %v1881_v63, %v1879_v62 }
 0xa3f   : > { %1716 = vmatpush3.bf16.msra.mxu1 %v1134_v9 }
 0xa40   : > { %1721 = vmatprep.subr.bf16.mxu1 %v2090_v0 }
 0xa42   : > { %1718 = vmatmul.mubr.msk.bf16.vlgmr.msra.gmra.mxu1 %vm559_vm1, %v1824_v10 }
 0xa43   : > { %1723 = vmatprep.mubr.msk.bf16.mxu1 %vm2091_vm0, %v2090_v0 }
 0xb02   : > { %v1177_v11 = vpop.f32.mrf.mxu1 }
 0xb03   : > { %v1529_v12 = vmul.f32 -1.442695, %v1177_v11 }
 0xb04   : > { %v1719_v13 = vpop.f32.mrf.mxu1 }
 0xb05   : > { %1882 = vpow2.f32 %v1529_v12 }
 0xb06   : > { %v1180_v14 = vpop.f32.mrf.mxu1 }
 0xb07   : > { %v1530_v15 = vmul.f32 -1.442695, %v1180_v14 }
 0xb08   : > { %v1720_v16 = vpop.f32.mrf.mxu1 }
 0xb09   : > { %1884 = vpow2.f32 %v1530_v15 }
 0xb12   : > { %v1883_v17 = vpop.eup %1882 }
 0xb13   : > { %v1190_v18 = vadd.f32 1.0, %v1883_v17 }
 0xb15   : > { %1886 = vrcp.f32 %v1190_v18 }
 0xb16   : > { %v1885_v19 = vpop.eup %1884 }
 0xb17   : > { %v1191_v20 = vadd.f32 1.0, %v1885_v19 }
 0xb19   : > { %1888 = vrcp.f32 %v1191_v20 }
 0xb22   : > { %v1887_v21 = vpop.eup %1886 }
 0xb26   : > { %v1889_v22 = vpop.eup %1888 }
 0xb27   : > { %v1196_v0 = vpack.c.bf16 %v1889_v22, %v1887_v21 }
 0xb29   : > { %1722 = vmatpush3.bf16.xpose.msra.mxu1 %v1196_v0 }
 0xb30   : > { %1724 = vmatmul.mubr.bf16.vlgmr.msra.gmra.mxu1 %v1197_v23 }
 0xbf0   : > { %v1232_v25 = vpop.f32.mrf.mxu1 }
 0xbf1   : > { %1238 = vst.msk [vmem:[%s436_s11] sm:$0xff] %vm559_vm1, %v1232_v25  ;;  %v1239_v26 = vpack.c.bf16 %v1232_v25, %v1232_v25 }
 0xbf2   : > { %v1725_v27 = vpop.f32.mrf.mxu1 }
 0xbf3   : > { %1730 = vmatmul.mubr.msk.bf16.vlgmr.msra.gmra.mxu0 %vm559_vm1, %v1239_v26 }
 0xbf4   : > { %v1235_v28 = vpop.f32.mrf.mxu1 }
 0xbf6   : > { %v1726_v29 = vpop.f32.mrf.mxu1 }
 0xcb3   : > { %v1292_v31 = vpop.f32.mrf.mxu0 }
 0xcb4   : > { %v1293_v32 = vadd.f32 %v1531_v30, %v1292_v31 }
 0xcb5   : > { %v1731_v33 = vpop.f32.mrf.mxu0 }
 0xcb6   : > { %v1299_v34 = vsel %vm1298_vm2, %v1293_v32, -inf }
 0xcb7   : > { %1300 = vmax.xlane.f32.xlu0 %v1299_v34  ;;  %v1295_v35 = vpop.f32.mrf.mxu0 }
 0xcb9   : > { %v1732_v36 = vpop.f32.mrf.mxu0 }
 0xd40   : > { %v1301_v37 = vpop.xlane.xlu0 %1300 }
 0xd41   : > { %v1302_v38 = vsub.f32 %v1293_v32, %v1301_v37 }
 0xd43   : > { %v1303_v39 = vmul.f32 1.442695, %v1302_v38 }
 0xd45   : > { %1890 = vpow2.f32 %v1303_v39 }
 0xd52   : > { %v1891_v40 = vpop.eup %1890 }
 0xd53   : > { %v1305_v1 = vsel %vm1298_vm2, %v1891_v40, 0.0 }
 0xd54   : > { %1306 = vadd.xlane.f32.xlu0 %v1305_v1 }
 0xddd   : > { %v1307_v2 = vpop.xlane.xlu0 %1306 }
 0xdde   : > { %1892 = vlog2.f32 %v1307_v2 }
 0xdeb   : > { %v1893_v3 = vpop.eup %1892 }
 0xdec   : > { %v1309_v4 = vmul.f32 0.6931472, %v1893_v3 }
 0xdee   : > { %v1310_v5 = vsub.f32 %v1302_v38, %v1309_v4 }
 0xdf0   : > { %1311 = vst.msk [vmem:[%s432_s30] sm:$0xff] %vm1298_vm2, %v1310_v5 }
 0xdf1 PF: > { %s2584_s30 = sld [smem:[#allocation16_spill]]  ;;  %s2587_s27 = smov %s2072_s28 }
 0xdf2   : > { %s2585_s21 = sld [smem:[#allocation15_spill]] }
 0xdf3   : > { %s2586_s29 = sld [smem:[#allocation17_spill]] }
 0xdf7   : > { %p23_p3 = scmp.ge.s32.totalorder %s2584_s30, 10  }
 0xdf8   : > { %s2588_s28 = smov %s2585_s21 }
 0xdf9   :  { %25 = sbr.rel (!%p23_p3) target bundleno = 11 (0xb), region = 138 }
 0xdfe   :  { %1345 = vsyncpa [#allocation3], 1 }
 0xdff   :  { %1347 = vsyncpa [#allocation3 + $0x1], 1 }
 0xe00   :  { %1348 = vsyncpa [#allocation5], 1 }
 0xe01   :  { %1350 = vsyncpa [#allocation5 + $0x1], 1 }
 0xe02   :  { %1351 = vsyncpa [#allocation8], 1 }

</bundles_post_ra>
